<compile_context>
chip_gen: v7x
topology: tpu7x:2x2x1
jax: 0.10.0
libtpu: 0.0.40
codegen_flags: <defaults>
</compile_context>

<pallas_src>
import math
from functools import partial

import jax
import jax.numpy as jnp
from jax.experimental import pallas as pl
from jax.experimental.pallas import tpu as pltpu


def _round_up(n, m):
    return (n + m - 1) // m * m


def _dqn_kernel(x_ref, w1_ref, b1_ref, w2_ref, b2_ref, w3_ref, b3_ref,
                w4_ref, b4_ref, out_ref):
    # fc1 + relu  (bf16 operands -> f32 accumulation on the MXU; bias/ReLU in
    # f32 on the VPU — safe on v5e which has no bf16 VALU).
    h = jnp.dot(x_ref[...], w1_ref[...], preferred_element_type=jnp.float32)
    h = jnp.maximum(h + b1_ref[...], 0.0)
    # fc2 + relu
    h = jnp.dot(h.astype(jnp.bfloat16), w2_ref[...],
                preferred_element_type=jnp.float32)
    h = jnp.maximum(h + b2_ref[...], 0.0)
    # fc3 + relu
    h = jnp.dot(h.astype(jnp.bfloat16), w3_ref[...],
                preferred_element_type=jnp.float32)
    h = jnp.maximum(h + b3_ref[...], 0.0)
    # fc4 (no activation) — lane-dense (TB, 128) store, emitted as bf16 to
    # halve the Q writeback stream.
    q = jnp.dot(h.astype(jnp.bfloat16), w4_ref[...],
                preferred_element_type=jnp.float32)
    out_ref[...] = (q + b4_ref[...]).astype(out_ref.dtype)


def prepare_params(params):
    """One-time layout plumbing: cast weights to bf16, pad the output layer to
    a lane-dense width. Call once per parameter update (or once for a frozen
    target network) — NOT per forward: for B~2 action selection the per-call
    pad/cast would dominate end-to-end latency."""
    hidden = params["w1"].shape[1]
    action_size = params["w4"].shape[1]
    out_pad = _round_up(action_size, 128)
    w4 = jnp.zeros((hidden, out_pad), jnp.bfloat16).at[:, :action_size].set(
        params["w4"].astype(jnp.bfloat16))
    b4 = jnp.zeros((1, out_pad), jnp.float32).at[:, :action_size].set(
        params["b4"].astype(jnp.float32))
    return {
        "w1": params["w1"].astype(jnp.bfloat16),   # (in_dim, H) — K unpadded
        "b1": params["b1"].astype(jnp.float32),
        "w2": params["w2"].astype(jnp.bfloat16),
        "b2": params["b2"].astype(jnp.float32),
        "w3": params["w3"].astype(jnp.bfloat16),
        "b3": params["b3"].astype(jnp.float32),
        "w4": w4,
        "b4": b4,
    }


@partial(jax.jit, static_argnames=("action_size", "block_b"))
def dqn_forward(x, prep, action_size, *, block_b=2048):
    """Fused forward: Q = relu(relu(relu(x@W1+b1)@W2+b2)@W3+b3)@W4+b4.

    x: (B, *state_shape) float32; prep: output of prepare_params().
    Returns (B, action_size) float32 Q-values.
    TODO(synk): no custom_vjp is defined — use for inference / target-network
    evaluation; differentiate the pure-JAX reference path for training.
    """
    B = x.shape[0]
    x = x.reshape(B, -1).astype(jnp.bfloat16)
    in_dim = x.shape[1]
    H = prep["w2"].shape[0]
    OUT_PAD = prep["w4"].shape[1]
    assert prep["w1"].shape == (in_dim, H)

    # Batch tiling: pad only to the sublane granule, then split into the
    # fewest tiles of size <= block_b (16-row granule keeps the bf16 (16,128)
    # tiling happy in the multi-tile case). v5e note: keep block_b <= 2048 or
    # set vmem_limit_bytes explicitly if you go larger.
    B8 = _round_up(B, 8)
    n_tiles = pl.cdiv(B8, block_b)
    if n_tiles == 1:
        TB = B8                                       # full-extent block
    else:
        TB = _round_up(pl.cdiv(B8, n_tiles), 16)
    B_PAD = n_tiles * TB

    if B_PAD == B:
        x_p = x                                       # no wrapper copy
    else:
        x_p = jnp.zeros((B_PAD, in_dim), jnp.bfloat16).at[:B, :].set(x)

    # Weights/biases use a constant index_map: DMA'd once, VMEM-resident
    # across all grid steps; only x / out tiles stream per step (auto
    # double-buffered).
    # TODO(synk): pipeline_mode=pl.Buffered(1) on the constant specs would
    # shave the redundant second weight buffer (~100 KiB); VMEM is ~6 MiB at
    # TB=2048 so it is not forced here.
    const2 = lambda i: (0, 0)
    in_specs = [
        pl.BlockSpec((TB, in_dim), lambda i: (i, 0)),   # x tile (K unpadded)
        pl.BlockSpec((in_dim, H), const2),              # w1
        pl.BlockSpec((1, H), const2),                   # b1
        pl.BlockSpec((H, H), const2),                   # w2
        pl.BlockSpec((1, H), const2),                   # b2
        pl.BlockSpec((H, H), const2),                   # w3
        pl.BlockSpec((1, H), const2),                   # b3
        pl.BlockSpec((H, OUT_PAD), const2),             # w4
        pl.BlockSpec((1, OUT_PAD), const2),             # b4
    ]
    out_spec = pl.BlockSpec((TB, OUT_PAD), lambda i: (i, 0))

    operands = (x_p, prep["w1"], prep["b1"], prep["w2"], prep["b2"],
                prep["w3"], prep["b3"], prep["w4"], prep["b4"])

    flops = 2 * B_PAD * (in_dim * H + H * H + H * H + H * OUT_PAD)
    bytes_accessed = sum(int(o.size) * o.dtype.itemsize for o in operands)
    bytes_accessed += B_PAD * OUT_PAD * 2               # bf16 output stream

    out_padded = pl.pallas_call(
        _dqn_kernel,
        out_shape=jax.ShapeDtypeStruct((B_PAD, OUT_PAD), jnp.bfloat16),
        grid=(n_tiles,),
        in_specs=in_specs,
        out_specs=out_spec,
        compiler_params=pltpu.CompilerParams(
            dimension_semantics=("parallel",)),
        cost_estimate=pl.CostEstimate(
            flops=flops, transcendentals=0, bytes_accessed=bytes_accessed),
    )(*operands)

    # TODO(synk): an action-major (16, TB) output layout would cut Q writeback
    # another ~8x (only 9 of 128 lanes are live); bigger restructure, skipped.
    return out_padded[:B, :action_size].astype(jnp.float32)


def init_params(key, in_dim, hidden, action_size):
    """Deterministic init mimicking PyTorch nn.Linear (uniform +-1/sqrt(fan_in)).
    Weights stored pre-transposed as (in, out) so the kernel computes x @ W."""
    dims = [(in_dim, hidden), (hidden, hidden), (hidden, hidden),
            (hidden, action_size)]
    params = {}
    for i, (fin, fout) in enumerate(dims, start=1):
        key, kw, kb = jax.random.split(key, 3)
        bound = 1.0 / jnp.sqrt(jnp.float32(fin))
        params[f"w{i}"] = jax.random.uniform(kw, (fin, fout), jnp.float32,
                                             -bound, bound)
        params[f"b{i}"] = jax.random.uniform(kb, (1, fout), jnp.float32,
                                             -bound, bound)
    return params


def reference_forward(x, params):
    x = x.reshape(x.shape[0], -1)
    h = jnp.maximum(x @ params["w1"] + params["b1"], 0.0)
    h = jnp.maximum(h @ params["w2"] + params["b2"], 0.0)
    h = jnp.maximum(h @ params["w3"] + params["b3"], 0.0)
    return h @ params["w4"] + params["b4"]


if __name__ == "__main__":
    key = jax.random.PRNGKey(0)

    # Example: state_shape = (4, 4, 4) -> in_dim = 64, action_size = 9, batch = 2
    state_shape = (4, 4, 4)
    in_dim = math.prod(state_shape)
    hidden = 128
    action_size = 9
    batch = 2

    key, kx, kp = jax.random.split(key, 3)
    x = jax.random.normal(kx, (batch,) + state_shape, jnp.float32)
    params = init_params(kp, in_dim, hidden, action_size)

    # Hoisted layout plumbing: once per parameter update, not per forward.
    prep = prepare_params(params)

    q = dqn_forward(x, prep, action_size)
    q = jax.block_until_ready(q)

    q_ref = reference_forward(x, params)
    assert q.shape == (batch, action_size)
    # bf16 matmul operands / bf16 output rounding with f32 accumulation vs
    # a pure-f32 reference.
    assert jnp.allclose(q, q_ref, atol=5e-2, rtol=5e-2)

    print("KERNEL_OK")
</pallas_src>

<mosaic_0001>
module attributes {stable_mosaic.version = 11 : i64} {
  func.func @_dqn_kernel(%arg0: i32, %arg1: memref<8x64xbf16, #tpu.memory_space<vmem>>, %arg2: memref<64x128xbf16, #tpu.memory_space<vmem>>, %arg3: memref<1x128xf32, #tpu.memory_space<vmem>>, %arg4: memref<128x128xbf16, #tpu.memory_space<vmem>>, %arg5: memref<1x128xf32, #tpu.memory_space<vmem>>, %arg6: memref<128x128xbf16, #tpu.memory_space<vmem>>, %arg7: memref<1x128xf32, #tpu.memory_space<vmem>>, %arg8: memref<128x128xbf16, #tpu.memory_space<vmem>>, %arg9: memref<1x128xf32, #tpu.memory_space<vmem>>, %arg10: memref<8x128xbf16, #tpu.memory_space<vmem>>) attributes {dimension_semantics = [#tpu.dimension_semantics<parallel>], iteration_bounds = array<i64: 1>, scalar_prefetch = 0 : i64, scratch_operands = 0 : i64, tpu.core_type = #tpu.core_type<tc>, window_params = [{transform_indices = @transform_0, window_bounds = array<i64: 8, 64>}, {pipeline_mode = #tpu.pipeline_mode<synchronous>, transform_indices = @transform_1, window_bounds = array<i64: 64, 128>}, {pipeline_mode = #tpu.pipeline_mode<synchronous>, transform_indices = @transform_2, window_bounds = array<i64: 1, 128>}, {pipeline_mode = #tpu.pipeline_mode<synchronous>, transform_indices = @transform_3, window_bounds = array<i64: 128, 128>}, {pipeline_mode = #tpu.pipeline_mode<synchronous>, transform_indices = @transform_4, window_bounds = array<i64: 1, 128>}, {pipeline_mode = #tpu.pipeline_mode<synchronous>, transform_indices = @transform_5, window_bounds = array<i64: 128, 128>}, {pipeline_mode = #tpu.pipeline_mode<synchronous>, transform_indices = @transform_6, window_bounds = array<i64: 1, 128>}, {pipeline_mode = #tpu.pipeline_mode<synchronous>, transform_indices = @transform_7, window_bounds = array<i64: 128, 128>}, {pipeline_mode = #tpu.pipeline_mode<synchronous>, transform_indices = @transform_8, window_bounds = array<i64: 1, 128>}, {transform_indices = @transform_9, window_bounds = array<i64: 8, 128>}]} {
    %c0 = arith.constant 0 : index
    %c0_0 = arith.constant 0 : index
    %0 = vector.load %arg1[%c0, %c0_0] : memref<8x64xbf16, #tpu.memory_space<vmem>>, vector<8x64xbf16>
    %c0_1 = arith.constant 0 : index
    %c0_2 = arith.constant 0 : index
    %1 = vector.load %arg2[%c0_1, %c0_2] : memref<64x128xbf16, #tpu.memory_space<vmem>>, vector<64x128xbf16>
    %cst = arith.constant dense<0.000000e+00> : vector<8x128xf32>
    %2 = tpu.matmul %0, %1, %cst {dimension_numbers = #tpu.dot_dimension_numbers<[1], [0], [0], [1], [0, 0, 1, 1], [], []>} : vector<8x64xbf16>, vector<64x128xbf16>, vector<8x128xf32> -> vector<8x128xf32>
    %c0_3 = arith.constant 0 : index
    %c0_4 = arith.constant 0 : index
    %3 = vector.load %arg3[%c0_3, %c0_4] : memref<1x128xf32, #tpu.memory_space<vmem>>, vector<1x128xf32>
    %4 = vector.broadcast %3 : vector<1x128xf32> to vector<8x128xf32>
    %5 = arith.addf %2, %4 : vector<8x128xf32>
    %cst_5 = arith.constant 0.000000e+00 : f32
    %6 = vector.broadcast %cst_5 : f32 to vector<8x128xf32>
    %7 = arith.maximumf %5, %6 : vector<8x128xf32>
    %8 = arith.truncf %7 : vector<8x128xf32> to vector<8x128xbf16>
    %c0_6 = arith.constant 0 : index
    %c0_7 = arith.constant 0 : index
    %9 = vector.load %arg4[%c0_6, %c0_7] : memref<128x128xbf16, #tpu.memory_space<vmem>>, vector<128x128xbf16>
    %cst_8 = arith.constant dense<0.000000e+00> : vector<8x128xf32>
    %10 = tpu.matmul %8, %9, %cst_8 {dimension_numbers = #tpu.dot_dimension_numbers<[1], [0], [0], [1], [0, 0, 1, 1], [], []>} : vector<8x128xbf16>, vector<128x128xbf16>, vector<8x128xf32> -> vector<8x128xf32>
    %c0_9 = arith.constant 0 : index
    %c0_10 = arith.constant 0 : index
    %11 = vector.load %arg5[%c0_9, %c0_10] : memref<1x128xf32, #tpu.memory_space<vmem>>, vector<1x128xf32>
    %12 = vector.broadcast %11 : vector<1x128xf32> to vector<8x128xf32>
    %13 = arith.addf %10, %12 : vector<8x128xf32>
    %cst_11 = arith.constant 0.000000e+00 : f32
    %14 = vector.broadcast %cst_11 : f32 to vector<8x128xf32>
    %15 = arith.maximumf %13, %14 : vector<8x128xf32>
    %16 = arith.truncf %15 : vector<8x128xf32> to vector<8x128xbf16>
    %c0_12 = arith.constant 0 : index
    %c0_13 = arith.constant 0 : index
    %17 = vector.load %arg6[%c0_12, %c0_13] : memref<128x128xbf16, #tpu.memory_space<vmem>>, vector<128x128xbf16>
    %cst_14 = arith.constant dense<0.000000e+00> : vector<8x128xf32>
    %18 = tpu.matmul %16, %17, %cst_14 {dimension_numbers = #tpu.dot_dimension_numbers<[1], [0], [0], [1], [0, 0, 1, 1], [], []>} : vector<8x128xbf16>, vector<128x128xbf16>, vector<8x128xf32> -> vector<8x128xf32>
    %c0_15 = arith.constant 0 : index
    %c0_16 = arith.constant 0 : index
    %19 = vector.load %arg7[%c0_15, %c0_16] : memref<1x128xf32, #tpu.memory_space<vmem>>, vector<1x128xf32>
    %20 = vector.broadcast %19 : vector<1x128xf32> to vector<8x128xf32>
    %21 = arith.addf %18, %20 : vector<8x128xf32>
    %cst_17 = arith.constant 0.000000e+00 : f32
    %22 = vector.broadcast %cst_17 : f32 to vector<8x128xf32>
    %23 = arith.maximumf %21, %22 : vector<8x128xf32>
    %24 = arith.truncf %23 : vector<8x128xf32> to vector<8x128xbf16>
    %c0_18 = arith.constant 0 : index
    %c0_19 = arith.constant 0 : index
    %25 = vector.load %arg8[%c0_18, %c0_19] : memref<128x128xbf16, #tpu.memory_space<vmem>>, vector<128x128xbf16>
    %cst_20 = arith.constant dense<0.000000e+00> : vector<8x128xf32>
    %26 = tpu.matmul %24, %25, %cst_20 {dimension_numbers = #tpu.dot_dimension_numbers<[1], [0], [0], [1], [0, 0, 1, 1], [], []>} : vector<8x128xbf16>, vector<128x128xbf16>, vector<8x128xf32> -> vector<8x128xf32>
    %c0_21 = arith.constant 0 : index
    %c0_22 = arith.constant 0 : index
    %27 = vector.load %arg9[%c0_21, %c0_22] : memref<1x128xf32, #tpu.memory_space<vmem>>, vector<1x128xf32>
    %28 = vector.broadcast %27 : vector<1x128xf32> to vector<8x128xf32>
    %29 = arith.addf %26, %28 : vector<8x128xf32>
    %30 = arith.truncf %29 : vector<8x128xf32> to vector<8x128xbf16>
    %c0_23 = arith.constant 0 : index
    %c0_24 = arith.constant 0 : index
    %31 = vector.load %arg10[%c0_23, %c0_24] : memref<8x128xbf16, #tpu.memory_space<vmem>>, vector<8x128xbf16>
    tpu.vector_store %arg10[%c0_23, %c0_24], %30 {strides = array<i32>} : memref<8x128xbf16, #tpu.memory_space<vmem>>, vector<8x128xbf16>,
    return
  }
  func.func @transform_0(%arg0: i32) -> (i32, i32) {
    %c0_i32 = arith.constant 0 : i32
    %c0_i32_0 = arith.constant 0 : i32
    return %arg0, %c0_i32 : i32, i32
  }
  func.func @transform_1(%arg0: i32) -> (i32, i32) {
    %c0_i32 = arith.constant 0 : i32
    %c0_i32_0 = arith.constant 0 : i32
    %c0_i32_1 = arith.constant 0 : i32
    return %c0_i32, %c0_i32_0 : i32, i32
  }
  func.func @transform_2(%arg0: i32) -> (i32, i32) {
    %c0_i32 = arith.constant 0 : i32
    %c0_i32_0 = arith.constant 0 : i32
    %c0_i32_1 = arith.constant 0 : i32
    return %c0_i32, %c0_i32_0 : i32, i32
  }
  func.func @transform_3(%arg0: i32) -> (i32, i32) {
    %c0_i32 = arith.constant 0 : i32
    %c0_i32_0 = arith.constant 0 : i32
    %c0_i32_1 = arith.constant 0 : i32
    return %c0_i32, %c0_i32_0 : i32, i32
  }
  func.func @transform_4(%arg0: i32) -> (i32, i32) {
    %c0_i32 = arith.constant 0 : i32
    %c0_i32_0 = arith.constant 0 : i32
    %c0_i32_1 = arith.constant 0 : i32
    return %c0_i32, %c0_i32_0 : i32, i32
  }
  func.func @transform_5(%arg0: i32) -> (i32, i32) {
    %c0_i32 = arith.constant 0 : i32
    %c0_i32_0 = arith.constant 0 : i32
    %c0_i32_1 = arith.constant 0 : i32
    return %c0_i32, %c0_i32_0 : i32, i32
  }
  func.func @transform_6(%arg0: i32) -> (i32, i32) {
    %c0_i32 = arith.constant 0 : i32
    %c0_i32_0 = arith.constant 0 : i32
    %c0_i32_1 = arith.constant 0 : i32
    return %c0_i32, %c0_i32_0 : i32, i32
  }
  func.func @transform_7(%arg0: i32) -> (i32, i32) {
    %c0_i32 = arith.constant 0 : i32
    %c0_i32_0 = arith.constant 0 : i32
    %c0_i32_1 = arith.constant 0 : i32
    return %c0_i32, %c0_i32_0 : i32, i32
  }
  func.func @transform_8(%arg0: i32) -> (i32, i32) {
    %c0_i32 = arith.constant 0 : i32
    %c0_i32_0 = arith.constant 0 : i32
    %c0_i32_1 = arith.constant 0 : i32
    return %c0_i32, %c0_i32_0 : i32, i32
  }
  func.func @transform_9(%arg0: i32) -> (i32, i32) {
    %c0_i32 = arith.constant 0 : i32
    %c0_i32_0 = arith.constant 0 : i32
    return %arg0, %c0_i32 : i32, i32
  }
}

</mosaic_0001>

<bundles_post_ra>
// kernel: dqn_forward.1
= control target key start
LH: loop header
LB: loop body
LE: loop exit
PB: predicated region body
PF: predicated region fallthrough
CT: control target
= control target key end

     0   :  { %14 = vsyncpa [#allocation3], 0  ;;  %s934_s0 = inlined_call_operand.vmem [shape: bf16[8,64], index: 0, kind: input, shape index: {}]   ;;  %s935_s1 = inlined_call_operand.hbm [shape: bf16[64,128], index: 1, kind: input, shape index: {}]   ;;  %s936_s2 = inlined_call_operand.vmem [shape: f32[1,128], index: 2, kind: input, shape index: {}]   ;;  %s937_s3 = inlined_call_operand.vmem [shape: bf16[128,128], index: 3, kind: input, shape index: {}]   ;;  %s938_s4 = inlined_call_operand.vmem [shape: f32[1,128], index: 4, kind: input, shape index: {}]   ;;  %s939_s5 = inlined_call_operand.hbm [shape: bf16[128,128], index: 5, kind: input, shape index: {}]   ;;  %s940_s6 = inlined_call_operand.vmem [shape: f32[1,128], index: 6, kind: input, shape index: {}]   ;;  %s941_s7 = inlined_call_operand.hbm [shape: bf16[128,128], index: 7, kind: input, shape index: {}]   ;;  %s942_s8 = inlined_call_operand.vmem [shape: f32[1,128], index: 8, kind: input, shape index: {}]   ;;  %s943_s9 = inlined_call_operand.vmem [shape: bf16[8,128], index: 9, kind: output, shape index: {}]  }
   0x1   :  { %15 = vsyncpa [#allocation5], 0  ;;  %s747_s30 = smov [#allocation4]   ;;  %s748_s11 = smov [#allocation2]  }
   0x2   :  { %s41_s10 = sshll.u32 %s747_s30, 4  ;;  %s23_s12 = sshll.u32 %s748_s11, 4  ;;  %s42_s10 = int_to_ptr.vmem [resolvable:$true] %s41_s10  ;;  %s804_s12 = int_to_ptr.vmem [resolvable:$true] %s23_s12 }
   0x3   :  { %s677_s15 = scalar_lea.hbm %s939_s5, 1024 }
   0x4   :  { %p678_p0 = scmp.ne.s32.totalorder %s939_s5, %s677_s15  ;;  %p681_p1 = scmp.lt.u32.totalorder %s677_s15, %s939_s5 }
   0x6   :  { %p683_p2 = pnand %p681_p1, %p678_p0 }
   0x8   :  { %686 = shalt.err (!%p683_p2)
}
   0x9   :  { %s687_s20 = scalar_lea.vmem %s42_s10, 1024  ;;  %p692_p4 = scmp.lt.s32.totalorder %s42_s10, %s42_s10 }
   0xa   :  { %p688_p3 = scmp.ne.s32.totalorder %s42_s10, %s687_s20  ;;  %p693_p5 = scmp.lt.s32.totalorder %s687_s20, %s687_s20 }
   0xc   :  { %p694_p6 = por %p693_p5, %p692_p4 }
   0xe   :  { %p695_p7 = pnand %p694_p6, %p688_p3 }
  0x10   :  { %698 = shalt.err (!%p695_p7)
}
  0x11   :  { %s749_s21 = smov 64   ;;  %s750_s22 = smov 4  }
  0x12   :  { %47 = dma.hbm_to_vmem [thread:$0]  %s939_s5, 1024, %s42_s10, [#allocation5], %s749_s21, %s749_s21, %s750_s22  }
  0x13   :  { %s699_s27 = scalar_lea.hbm %s935_s1, 512 }
  0x14   :  { %p700_p8 = scmp.ne.s32.totalorder %s935_s1, %s699_s27  ;;  %p703_p9 = scmp.lt.u32.totalorder %s699_s27, %s935_s1 }
  0x16   :  { %p705_p10 = pnand %p703_p9, %p700_p8 }
  0x18   :  { %708 = shalt.err (!%p705_p10)
}
  0x19   :  { %s709_s13 = scalar_lea.vmem %s804_s12, 512  ;;  %p714_p12 = scmp.lt.s32.totalorder %s804_s12, %s804_s12 }
  0x1a   :  { %p710_p11 = scmp.ne.s32.totalorder %s804_s12, %s709_s13  ;;  %p715_p13 = scmp.lt.s32.totalorder %s709_s13, %s709_s13 }
  0x1c   :  { %p716_p0 = por %p715_p13, %p714_p12 }
  0x1e   :  { %p717_p1 = pnand %p716_p0, %p710_p11 }
  0x20   :  { %720 = shalt.err (!%p717_p1)
}
  0x21   :  { %29 = dma.hbm_to_vmem [thread:$0]  %s935_s1, 512, %s804_s12, [#allocation3], %s749_s21, %s749_s21, %s750_s22  }
  0x22   :  { %s751_s14 = smov [#allocation6]   ;;  %s721_s18 = scalar_lea.hbm %s941_s7, 1024 }
  0x23   :  { %s55_s15 = sshll.u32 %s751_s14, 4  ;;  %p722_p2 = scmp.ne.s32.totalorder %s941_s7, %s721_s18  ;;  %s56_s15 = int_to_ptr.vmem [resolvable:$true] %s55_s15 }
  0x24   :  { %p725_p3 = scmp.lt.u32.totalorder %s721_s18, %s941_s7 }
  0x26   :  { %p727_p4 = pnand %p725_p3, %p722_p2 }
  0x28   :  { %730 = shalt.err (!%p727_p4)
}
  0x29   :  { %s731_s25 = scalar_lea.vmem %s56_s15, 1024  ;;  %p736_p6 = scmp.lt.s32.totalorder %s56_s15, %s56_s15 }
  0x2a   :  { %p732_p5 = scmp.ne.s32.totalorder %s56_s15, %s731_s25  ;;  %p737_p7 = scmp.lt.s32.totalorder %s731_s25, %s731_s25 }
  0x2c   :  { %p738_p8 = por %p737_p7, %p736_p6 }
  0x2e   :  { %p739_p9 = pnand %p738_p8, %p732_p5 }
  0x30   :  { %742 = shalt.err (!%p739_p9)
}
  0x31   :  { %61 = dma.hbm_to_vmem [thread:$0]  %s941_s7, 1024, %s56_s15, [#allocation5], %s749_s21, %s749_s21, %s750_s22  }
  0x32   :  { %743 = dma.done.wait [#allocation3], 512  }
  0x33   :  { %744 = vsyncadd [#allocation3], 4294966784 }
  0x34   :  { %745 = dma.done.wait [#allocation5], 2048  }
  0x35   :  { %746 = vsyncadd [#allocation5], 4294965248  ;;  %v752_v0 = vmov 0.0   ;;  %vm753_vm0 = vmmov 0   ;;  %v649_v1 = vld [vmem:[#allocation2] sm:$0xff]   ;;  %v650_v2 = vld [vmem:[#allocation2 + $0x8] sm:$0xff]  }
  0x36   :  { %570 = vmatprep.subr.bf16.mxu0 %v752_v0  ;;  %578 = vmatprep.mubr.msk.bf16.mxu0 %vm753_vm0, %v752_v0  ;;  %v653_v3 = vld [vmem:[%s937_s3] sm:$0xff]   ;;  %v651_v4 = vld [vmem:[#allocation2 + $0x10] sm:$0xff]   ;;  %v654_v5 = vld [vmem:[%s937_s3 + $0x8] sm:$0xff]   ;;  %vm114_vm1 = vcmask 523264  }
  0x37   :  { %582 = vmatprep.subr.bf16.mxu1 %v752_v0  ;;  %598 = vmatprep.mubr.msk.bf16.mxu1 %vm753_vm0, %v752_v0  ;;  %v652_v6 = vld [vmem:[#allocation2 + $0x18] sm:$0xff]   ;;  %v655_v7 = vld [vmem:[%s937_s3 + $0x10] sm:$0xff]   ;;  %v74_v8 = vld [vmem:[%s934_s0] sm:$0xf] }
  0x38   :  { %571 = vmatpush3.bf16.msra.mxu0 %v649_v1  ;;  %583 = vmatpush3.bf16.msra.mxu1 %v653_v3  ;;  %v656_v9 = vld [vmem:[%s937_s3 + $0x18] sm:$0xff]   ;;  %v657_v10 = vld [vmem:[%s937_s3 + $0x20] sm:$0xff]   ;;  %v658_v11 = vld [vmem:[%s937_s3 + $0x28] sm:$0xff]  }
  0x39   :  { %572 = vmatprep.subr.bf16.mxu0 %v752_v0  ;;  %584 = vmatprep.subr.bf16.mxu1 %v752_v0  ;;  %v659_v12 = vld [vmem:[%s937_s3 + $0x30] sm:$0xff]   ;;  %v660_v13 = vld [vmem:[%s937_s3 + $0x38] sm:$0xff]   ;;  %v661_v14 = vld [vmem:[#allocation4] sm:$0xff]  }
  0x3a   :  { %v662_v15 = vld [vmem:[#allocation4 + $0x8] sm:$0xff]   ;;  %v663_v16 = vld [vmem:[#allocation4 + $0x10] sm:$0xff]   ;;  %v664_v17 = vld [vmem:[#allocation4 + $0x18] sm:$0xff]  }
  0x3b   :  { %v665_v18 = vld [vmem:[#allocation4 + $0x20] sm:$0xff]   ;;  %v666_v19 = vld [vmem:[#allocation4 + $0x28] sm:$0xff]   ;;  %v667_v28 = vld [vmem:[#allocation4 + $0x30] sm:$0xff]  }
  0x3c   :  { %573 = vmatpush3.bf16.msra.mxu0 %v650_v2  ;;  %585 = vmatpush3.bf16.msra.mxu1 %v654_v5  ;;  %v505_v20 = vld [vmem:[%s936_s2] ss:$0 sm:$0xff]  ;;  %v668_v29 = vld [vmem:[#allocation4 + $0x38] sm:$0xff]   ;;  %v670_v31 = vld [vmem:[#allocation6 + $0x8] sm:$0xff]  }
  0x3d   :  { %574 = vmatprep.subr.bf16.mxu0 %v752_v0  ;;  %586 = vmatprep.subr.bf16.mxu1 %v752_v0  ;;  %v669_v30 = vld [vmem:[#allocation6] sm:$0xff]   ;;  %v671_v32 = vld [vmem:[#allocation6 + $0x10] sm:$0xff]   ;;  %v672_v33 = vld [vmem:[#allocation6 + $0x18] sm:$0xff]  }
  0x3e   :  { %v673_v34 = vld [vmem:[#allocation6 + $0x20] sm:$0xff]   ;;  %v674_v35 = vld [vmem:[#allocation6 + $0x28] sm:$0xff]   ;;  %v675_v44 = vld [vmem:[#allocation6 + $0x30] sm:$0xff]  }
  0x3f   :  { %v511_v36 = vld [vmem:[%s938_s4] ss:$0 sm:$0xff]  ;;  %v676_v45 = vld [vmem:[#allocation6 + $0x38] sm:$0xff]  }
  0x40   :  { %575 = vmatpush3.bf16.msra.mxu0 %v651_v4  ;;  %587 = vmatpush3.bf16.msra.mxu1 %v655_v7  ;;  %v520_v46 = vld [vmem:[%s940_s6] ss:$0 sm:$0xff] }
  0x41   :  { %576 = vmatprep.subr.bf16.mxu0 %v752_v0  ;;  %588 = vmatprep.subr.bf16.mxu1 %v752_v0  ;;  %v529_v54 = vld [vmem:[%s942_s8] ss:$0 sm:$0xff] }
  0x44   :  { %577 = vmatpush3.bf16.msra.mxu0 %v652_v6  ;;  %589 = vmatpush3.bf16.msra.mxu1 %v656_v9 }
  0x45   :  { %602 = vmatprep.subr.bf16.mxu0 %v752_v0  ;;  %590 = vmatprep.subr.bf16.mxu1 %v752_v0 }
  0x47   :  { %579 = vmatmul.mubr.msk.bf16.vlgmr.msra.gmra.mrb[0].mxu0 %vm114_vm1, %v74_v8 }
  0x48   :  { %618 = vmatprep.mubr.msk.bf16.mxu0 %vm753_vm0, %v752_v0  ;;  %591 = vmatpush3.bf16.msra.mxu1 %v657_v10 }
  0x49   :  { %592 = vmatprep.subr.bf16.mxu1 %v752_v0  ;;  %603 = vmatpush3.bf16.msra.mxu0 %v661_v14 }
  0x4a   :  { %604 = vmatprep.subr.bf16.mxu0 %v752_v0 }
  0x4c   :  { %593 = vmatpush3.bf16.msra.mxu1 %v658_v11 }
  0x4d   :  { %594 = vmatprep.subr.bf16.mxu1 %v752_v0  ;;  %605 = vmatpush3.bf16.msra.mxu0 %v662_v15 }
  0x4e   :  { %606 = vmatprep.subr.bf16.mxu0 %v752_v0 }
  0x50   :  { %595 = vmatpush3.bf16.msra.mxu1 %v659_v12 }
  0x51   :  { %596 = vmatprep.subr.bf16.mxu1 %v752_v0  ;;  %607 = vmatpush3.bf16.msra.mxu0 %v663_v16 }
  0x52   :  { %608 = vmatprep.subr.bf16.mxu0 %v752_v0 }
  0x54   :  { %597 = vmatpush3.bf16.msra.mxu1 %v660_v13 }
  0x55   :  { %622 = vmatprep.subr.bf16.mxu1 %v752_v0  ;;  %609 = vmatpush3.bf16.msra.mxu0 %v664_v17 }
  0x56   :  { %610 = vmatprep.subr.bf16.mxu0 %v752_v0 }
  0x59   :  { %611 = vmatpush3.bf16.msra.mxu0 %v665_v18 }
  0x5a   :  { %612 = vmatprep.subr.bf16.mxu0 %v752_v0 }
  0x5d   :  { %613 = vmatpush3.bf16.msra.mxu0 %v666_v19 }
  0x5e   :  { %614 = vmatprep.subr.bf16.mxu0 %v752_v0 }
  0x61   :  { %615 = vmatpush3.bf16.msra.mxu0 %v667_v28 }
  0x62   :  { %616 = vmatprep.subr.bf16.mxu0 %v752_v0 }
  0x65   :  { %617 = vmatpush3.bf16.msra.mxu0 %v668_v29 }
 0x11a   :  { %v152_v21 = vpop.f32.mrb[0].mxu0 }
 0x11b   :  { %v153_v22 = vadd.f32 %v505_v20, %v152_v21  ;;  %v580_v23 = vpop.f32.mrb[1].mxu0 }
 0x11c   :  { %v155_v24 = vpop.f32.mrb[2].mxu0 }
 0x11d   :  { %v158_v25 = vmax.f32 %v153_v22, 0.0  ;;  %v581_v26 = vpop.f32.mrb[3].mxu0 }
 0x11f   :  { %v159_v27 = vpack.c.bf16 %v158_v25, %v158_v25 }
 0x121   :  { %599 = vmatmul.mubr.bf16.vlgmr.msra.gmra.mrb[0].mxu1 %v159_v27 }
 0x122   :  { %638 = vmatprep.mubr.msk.bf16.mxu1 %vm753_vm0, %v752_v0  ;;  %623 = vmatpush3.bf16.msra.mxu1 %v669_v30 }
 0x123   :  { %624 = vmatprep.subr.bf16.mxu1 %v752_v0 }
 0x126   :  { %625 = vmatpush3.bf16.msra.mxu1 %v670_v31 }
 0x127   :  { %626 = vmatprep.subr.bf16.mxu1 %v752_v0 }
 0x12a   :  { %627 = vmatpush3.bf16.msra.mxu1 %v671_v32 }
 0x12b   :  { %628 = vmatprep.subr.bf16.mxu1 %v752_v0 }
 0x12e   :  { %629 = vmatpush3.bf16.msra.mxu1 %v672_v33 }
 0x12f   :  { %630 = vmatprep.subr.bf16.mxu1 %v752_v0 }
 0x132   :  { %631 = vmatpush3.bf16.msra.mxu1 %v673_v34 }
 0x133   :  { %632 = vmatprep.subr.bf16.mxu1 %v752_v0 }
 0x136   :  { %633 = vmatpush3.bf16.msra.mxu1 %v674_v35 }
 0x137   :  { %634 = vmatprep.subr.bf16.mxu1 %v752_v0 }
 0x13a   :  { %635 = vmatpush3.bf16.msra.mxu1 %v675_v44 }
 0x13b   :  { %636 = vmatprep.subr.bf16.mxu1 %v752_v0 }
 0x13e   :  { %637 = vmatpush3.bf16.msra.mxu1 %v676_v45 }
 0x1f4   :  { %v265_v37 = vpop.f32.mrb[0].mxu1 }
 0x1f5   :  { %v266_v38 = vadd.f32 %v511_v36, %v265_v37  ;;  %v600_v39 = vpop.f32.mrb[1].mxu1 }
 0x1f6   :  { %v268_v40 = vpop.f32.mrb[2].mxu1 }
 0x1f7   :  { %v271_v41 = vmax.f32 %v266_v38, 0.0  ;;  %v601_v42 = vpop.f32.mrb[3].mxu1 }
 0x1f9   :  { %v272_v43 = vpack.c.bf16 %v271_v41, %v271_v41 }
 0x1fb   :  { %619 = vmatmul.mubr.bf16.vlgmr.msra.gmra.mrb[4].mxu0 %v272_v43 }
 0x2ce   :  { %v378_v47 = vpop.f32.mrb[4].mxu0 }
 0x2cf   :  { %v379_v48 = vadd.f32 %v520_v46, %v378_v47  ;;  %v620_v49 = vpop.f32.mrb[5].mxu0 }
 0x2d0   :  { %v381_v50 = vpop.f32.mrb[6].mxu0 }
 0x2d1   :  { %v384_v51 = vmax.f32 %v379_v48, 0.0  ;;  %v621_v52 = vpop.f32.mrb[7].mxu0 }
 0x2d3   :  { %v385_v53 = vpack.c.bf16 %v384_v51, %v384_v51 }
 0x2d5   :  { %639 = vmatmul.mubr.bf16.vlgmr.msra.gmra.mrb[4].mxu1 %v385_v53 }
 0x3a8   :  { %v491_v55 = vpop.f32.mrb[4].mxu1 }
 0x3a9   :  { %v492_v56 = vadd.f32 %v529_v54, %v491_v55  ;;  %v640_v57 = vpop.f32.mrb[5].mxu1 }
 0x3aa   :  { %v494_v58 = vpop.f32.mrb[6].mxu1 }
 0x3ab   :  { %v497_v59 = vpack.c.bf16 %v492_v56, %v492_v56  ;;  %v641_v60 = vpop.f32.mrb[7].mxu1 }
 0x3ad   :  { %498 = vst [vmem:[%s943_s9] sm:$0xf] %v497_v59 }
 0x3ae   :  { %503 = vsyncpa [#allocation3], 1 }
 0x3af   :  { %504 = vsyncpa [#allocation5], 1 }

</bundles_post_ra>
